<compile_context>
chip_gen: v6e
topology: v6e:2x2x1
jax: 0.10.0
libtpu: 0.0.40
codegen_flags: <defaults>
</compile_context>

<pallas_src>
import jax
import jax.numpy as jnp
from jax.experimental import pallas as pl
from jax.experimental.pallas import tpu as pltpu


def _round_up(n: int, m: int) -> int:
    return ((n + m - 1) // m) * m


def mlp_kernel(x_ref, w1_ref, b1_ref, w2_ref, b2_ref, o_ref, acc_ref):
    h_idx = pl.program_id(1)

    @pl.when(h_idx == 0)
    def _init():
        acc_ref[...] = jnp.zeros_like(acc_ref)

    # Layer 1 on this hidden tile: (bt, Din) @ (Din, ht) -> f32 accumulation.
    hid = jnp.dot(x_ref[...], w1_ref[...], preferred_element_type=jnp.float32)
    hid = jnp.maximum(hid + b1_ref[...], 0.0)          # bias + ReLU in f32 (VPU)

    # Layer 2 partial product, accumulated across hidden tiles in f32 VMEM.
    acc_ref[...] += jnp.dot(hid.astype(w2_ref.dtype), w2_ref[...],
                            preferred_element_type=jnp.float32)

    @pl.when(h_idx == pl.num_programs(1) - 1)
    def _finalize():
        o_ref[...] = (acc_ref[...] + b2_ref[...]).astype(o_ref.dtype)


def mlp_forward(x, w1, b1, w2, b2, *, batch_tile=256, hidden_tile=512,
                compute_dtype=jnp.bfloat16):
    """forward(x) = (relu(x @ W1 + b1)) @ W2 + b2, fused on TPU."""
    out_dtype = x.dtype
    B, Din = x.shape
    Din2, H = w1.shape
    H2, Dout = w2.shape
    assert Din == Din2 and H == H2

    # --- tile / padding geometry -------------------------------------------
    # Lane-dense feature dims (multiples of 128); batch tile multiple of 8.
    Din_p = _round_up(Din, 128)
    Dout_p = _round_up(Dout, 128)
    bt = _round_up(max(8, min(batch_tile, _round_up(B, 8))), 8)
    B_p = _round_up(B, bt)
    ht = _round_up(max(128, min(hidden_tile, _round_up(H, 128))), 128)
    H_p = _round_up(H, ht)

    # --- cast + zero-pad (zero padding is exact for this MLP) ---------------
    b1 = jnp.asarray(b1, jnp.float32).reshape(1, H)
    b2 = jnp.asarray(b2, jnp.float32).reshape(1, Dout)

    x_p = jnp.pad(x.astype(compute_dtype), ((0, B_p - B), (0, Din_p - Din)))
    w1_p = jnp.pad(w1.astype(compute_dtype), ((0, Din_p - Din), (0, H_p - H)))
    b1_p = jnp.pad(b1, ((0, 0), (0, H_p - H)))
    w2_p = jnp.pad(w2.astype(compute_dtype), ((0, H_p - H), (0, Dout_p - Dout)))
    b2_p = jnp.pad(b2, ((0, 0), (0, Dout_p - Dout)))

    grid = (B_p // bt, H_p // ht)

    out_p = pl.pallas_call(
        mlp_kernel,
        out_shape=jax.ShapeDtypeStruct((B_p, Dout_p), out_dtype),
        grid_spec=pl.GridSpec(
            grid=grid,
            in_specs=[
                # x: tiled over batch only, re-used across hidden tiles.
                pl.BlockSpec((bt, Din_p), lambda i, h: (i, 0)),
                # W1 / b1: streamed per hidden tile.
                pl.BlockSpec((Din_p, ht), lambda i, h: (0, h)),
                pl.BlockSpec((1, ht), lambda i, h: (0, h)),
                # W2: streamed per hidden tile.
                pl.BlockSpec((ht, Dout_p), lambda i, h: (h, 0)),
                # b2: tiny, constant block.
                pl.BlockSpec((1, Dout_p), lambda i, h: (0, 0)),
            ],
            out_specs=pl.BlockSpec((bt, Dout_p), lambda i, h: (i, 0)),
            scratch_shapes=[pltpu.VMEM((bt, Dout_p), jnp.float32)],
        ),
        compiler_params=pltpu.CompilerParams(
            dimension_semantics=("parallel", "arbitrary"),
            vmem_limit_bytes=48 * 1024 * 1024,
        ),
    )(x_p, w1_p, b1_p, w2_p, b2_p)

    return out_p[:B, :Dout]


if __name__ == "__main__":
    # Small, deterministic shapes consistent with a 2-layer MLP Model
    # (batch matches Config.batch_size = 32).
    batch, d_in, d_hidden, d_out = 32, 32, 64, 32

    key = jax.random.PRNGKey(0)
    kx, k1, k2, k3, k4 = jax.random.split(key, 5)

    x = jax.random.normal(kx, (batch, d_in), dtype=jnp.float32)
    w1 = jax.random.normal(k1, (d_in, d_hidden), dtype=jnp.float32) * 0.1
    b1 = jax.random.normal(k2, (1, d_hidden), dtype=jnp.float32) * 0.1
    w2 = jax.random.normal(k3, (d_hidden, d_out), dtype=jnp.float32) * 0.1
    b2 = jax.random.normal(k4, (1, d_out), dtype=jnp.float32) * 0.1

    out = mlp_forward(x, w1, b1, w2, b2)
    out = jax.block_until_ready(out)

    # Pure-JAX f32 reference (kernel computes in bf16 with f32 accumulation,
    # so use a tolerance appropriate for bf16 inputs).
    ref = jnp.maximum(x @ w1 + b1, 0.0) @ w2 + b2
    assert out.shape == (batch, d_out)
    assert jnp.allclose(out, ref, atol=3e-2, rtol=3e-2), "mismatch vs reference"

    print("KERNEL_OK")
</pallas_src>

<mosaic_0001>
module attributes {stable_mosaic.version = 11 : i64} {
  func.func @mlp_kernel(%arg0: i32, %arg1: i32, %arg2: memref<32x128xbf16, #tpu.memory_space<vmem>>, %arg3: memref<128x128xbf16, #tpu.memory_space<vmem>>, %arg4: memref<1x128xf32, #tpu.memory_space<vmem>>, %arg5: memref<128x128xbf16, #tpu.memory_space<vmem>>, %arg6: memref<1x128xf32, #tpu.memory_space<vmem>>, %arg7: memref<32x128xf32, #tpu.memory_space<vmem>>, %arg8: memref<32x128xf32, #tpu.memory_space<vmem>>) attributes {dimension_semantics = [#tpu.dimension_semantics<parallel>, #tpu.dimension_semantics<arbitrary>], iteration_bounds = array<i64: 1, 1>, scalar_prefetch = 0 : i64, scratch_operands = 1 : i64, tpu.core_type = #tpu.core_type<tc>, window_params = [{transform_indices = @transform_0, window_bounds = array<i64: 32, 128>}, {transform_indices = @transform_1, window_bounds = array<i64: 128, 128>}, {transform_indices = @transform_2, window_bounds = array<i64: 1, 128>}, {transform_indices = @transform_3, window_bounds = array<i64: 128, 128>}, {pipeline_mode = #tpu.pipeline_mode<synchronous>, transform_indices = @transform_4, window_bounds = array<i64: 1, 128>}, {transform_indices = @transform_5, window_bounds = array<i64: 32, 128>}]} {
    %c0_i32 = arith.constant 0 : i32
    %0 = arith.cmpi eq, %arg1, %c0_i32 : i32
    %1 = arith.extui %0 : i1 to i32
    %c0_i32_0 = arith.constant 0 : i32
    %2 = arith.cmpi ne, %1, %c0_i32_0 : i32
    scf.if %2 {
      %cst_16 = arith.constant 0.000000e+00 : f32
      %20 = vector.broadcast %cst_16 : f32 to vector<32x128xf32>
      %c0_17 = arith.constant 0 : index
      %c0_18 = arith.constant 0 : index
      %21 = vector.load %arg8[%c0_17, %c0_18] : memref<32x128xf32, #tpu.memory_space<vmem>>, vector<32x128xf32>
      tpu.vector_store %arg8[%c0_17, %c0_18], %20 {strides = array<i32>} : memref<32x128xf32, #tpu.memory_space<vmem>>, vector<32x128xf32>,
    } else {
    }
    %c0 = arith.constant 0 : index
    %c0_1 = arith.constant 0 : index
    %3 = vector.load %arg2[%c0, %c0_1] : memref<32x128xbf16, #tpu.memory_space<vmem>>, vector<32x128xbf16>
    %c0_2 = arith.constant 0 : index
    %c0_3 = arith.constant 0 : index
    %4 = vector.load %arg3[%c0_2, %c0_3] : memref<128x128xbf16, #tpu.memory_space<vmem>>, vector<128x128xbf16>
    %cst = arith.constant dense<0.000000e+00> : vector<32x128xf32>
    %5 = tpu.matmul %3, %4, %cst {dimension_numbers = #tpu.dot_dimension_numbers<[1], [0], [0], [1], [0, 0, 1, 1], [], []>} : vector<32x128xbf16>, vector<128x128xbf16>, vector<32x128xf32> -> vector<32x128xf32>
    %c0_4 = arith.constant 0 : index
    %c0_5 = arith.constant 0 : index
    %6 = vector.load %arg4[%c0_4, %c0_5] : memref<1x128xf32, #tpu.memory_space<vmem>>, vector<1x128xf32>
    %7 = vector.broadcast %6 : vector<1x128xf32> to vector<32x128xf32>
    %8 = arith.addf %5, %7 : vector<32x128xf32>
    %cst_6 = arith.constant 0.000000e+00 : f32
    %9 = vector.broadcast %cst_6 : f32 to vector<32x128xf32>
    %10 = arith.maximumf %8, %9 : vector<32x128xf32>
    %c0_7 = arith.constant 0 : index
    %c0_8 = arith.constant 0 : index
    %11 = vector.load %arg8[%c0_7, %c0_8] : memref<32x128xf32, #tpu.memory_space<vmem>>, vector<32x128xf32>
    %12 = arith.truncf %10 : vector<32x128xf32> to vector<32x128xbf16>
    %c0_9 = arith.constant 0 : index
    %c0_10 = arith.constant 0 : index
    %13 = vector.load %arg5[%c0_9, %c0_10] : memref<128x128xbf16, #tpu.memory_space<vmem>>, vector<128x128xbf16>
    %cst_11 = arith.constant dense<0.000000e+00> : vector<32x128xf32>
    %14 = tpu.matmul %12, %13, %cst_11 {dimension_numbers = #tpu.dot_dimension_numbers<[1], [0], [0], [1], [0, 0, 1, 1], [], []>} : vector<32x128xbf16>, vector<128x128xbf16>, vector<32x128xf32> -> vector<32x128xf32>
    %15 = arith.addf %11, %14 : vector<32x128xf32>
    %c0_12 = arith.constant 0 : index
    %c0_13 = arith.constant 0 : index
    %16 = vector.load %arg8[%c0_12, %c0_13] : memref<32x128xf32, #tpu.memory_space<vmem>>, vector<32x128xf32>
    tpu.vector_store %arg8[%c0_12, %c0_13], %15 {strides = array<i32>} : memref<32x128xf32, #tpu.memory_space<vmem>>, vector<32x128xf32>,
    %c0_i32_14 = arith.constant 0 : i32
    %17 = arith.cmpi eq, %arg1, %c0_i32_14 : i32
    %18 = arith.extui %17 : i1 to i32
    %c0_i32_15 = arith.constant 0 : i32
    %19 = arith.cmpi ne, %18, %c0_i32_15 : i32
    scf.if %19 {
      %c0_16 = arith.constant 0 : index
      %c0_17 = arith.constant 0 : index
      %20 = vector.load %arg8[%c0_16, %c0_17] : memref<32x128xf32, #tpu.memory_space<vmem>>, vector<32x128xf32>
      %c0_18 = arith.constant 0 : index
      %c0_19 = arith.constant 0 : index
      %21 = vector.load %arg6[%c0_18, %c0_19] : memref<1x128xf32, #tpu.memory_space<vmem>>, vector<1x128xf32>
      %22 = vector.broadcast %21 : vector<1x128xf32> to vector<32x128xf32>
      %23 = arith.addf %20, %22 : vector<32x128xf32>
      %c0_20 = arith.constant 0 : index
      %c0_21 = arith.constant 0 : index
      %24 = vector.load %arg7[%c0_20, %c0_21] : memref<32x128xf32, #tpu.memory_space<vmem>>, vector<32x128xf32>
      tpu.vector_store %arg7[%c0_20, %c0_21], %23 {strides = array<i32>} : memref<32x128xf32, #tpu.memory_space<vmem>>, vector<32x128xf32>,
    } else {
    }
    return
  }
  func.func @transform_0(%arg0: i32, %arg1: i32) -> (i32, i32) {
    %c0_i32 = arith.constant 0 : i32
    %c0_i32_0 = arith.constant 0 : i32
    return %arg0, %c0_i32 : i32, i32
  }
  func.func @transform_1(%arg0: i32, %arg1: i32) -> (i32, i32) {
    %c0_i32 = arith.constant 0 : i32
    %c0_i32_0 = arith.constant 0 : i32
    return %c0_i32, %arg1 : i32, i32
  }
  func.func @transform_2(%arg0: i32, %arg1: i32) -> (i32, i32) {
    %c0_i32 = arith.constant 0 : i32
    %c0_i32_0 = arith.constant 0 : i32
    return %c0_i32, %arg1 : i32, i32
  }
  func.func @transform_3(%arg0: i32, %arg1: i32) -> (i32, i32) {
    %c0_i32 = arith.constant 0 : i32
    %c0_i32_0 = arith.constant 0 : i32
    return %arg1, %c0_i32 : i32, i32
  }
  func.func @transform_4(%arg0: i32, %arg1: i32) -> (i32, i32) {
    %c0_i32 = arith.constant 0 : i32
    %c0_i32_0 = arith.constant 0 : i32
    %c0_i32_1 = arith.constant 0 : i32
    return %c0_i32, %c0_i32_0 : i32, i32
  }
  func.func @transform_5(%arg0: i32, %arg1: i32) -> (i32, i32) {
    %c0_i32 = arith.constant 0 : i32
    %c0_i32_0 = arith.constant 0 : i32
    return %arg0, %c0_i32 : i32, i32
  }
}

</mosaic_0001>

<bundles_post_ra>
// kernel: tpu_custom_call.1
= control target key start
LH: loop header
LB: loop body
LE: loop exit
PB: predicated region body
PF: predicated region fallthrough
CT: control target
= control target key end

     0   :  { %10 = vsyncpa [#allocation4], 0  ;;  %s626_s0 = inlined_call_operand.hbm [shape: bf16[32,128], index: 0, kind: input, shape index: {}]   ;;  %s627_s1 = inlined_call_operand.hbm [shape: bf16[128,128], index: 1, kind: input, shape index: {}]   ;;  %s628_s2 = inlined_call_operand.vmem [shape: f32[1,128], index: 2, kind: input, shape index: {}]   ;;  %s629_s3 = inlined_call_operand.hbm [shape: bf16[128,128], index: 3, kind: input, shape index: {}]   ;;  %s630_s4 = inlined_call_operand.vmem [shape: f32[1,128], index: 4, kind: input, shape index: {}]   ;;  %s631_s5 = inlined_call_operand.hbm [shape: f32[32,128], index: 5, kind: output, shape index: {}]  }
   0x1   :  { %11 = vsyncpa [#allocation7], 0 }
   0x2   :  { %12 = vsyncpa [#allocation5], 0  ;;  %s570_s18 = smov [#allocation6]   ;;  %s571_s20 = smov [#allocation3]  }
   0x3   :  { %s30_s19 = sshll.u32 %s570_s18, 4  ;;  %s18_s21 = sshll.u32 %s571_s20, 4  ;;  %s31_s19 = int_to_ptr.vmem [resolvable:$true] %s30_s19  ;;  %s19_s21 = int_to_ptr.vmem [resolvable:$true] %s18_s21 }
   0x4   :  { %s492_s22 = scalar_lea.vmem %s31_s19, 1024  ;;  %p497_p1 = scmp.lt.s32.totalorder %s31_s19, %s31_s19 }
   0x5   :  { %p493_p0 = scmp.ne.s32.totalorder %s31_s19, %s492_s22  ;;  %p498_p2 = scmp.lt.s32.totalorder %s492_s22, %s492_s22 }
   0x7   :  { %p499_p3 = por %p498_p2, %p497_p1 }
   0x9   :  { %p500_p4 = pnand %p499_p3, %p493_p0 }
   0xb   :  { %503 = shalt.err (!%p500_p4)
}
   0xc   :  { %s572_s23 = smov 64   ;;  %s573_s24 = smov 4  }
   0xd   :  { %36 = dma.hbm_to_vmem [thread:$0]  %s627_s1, 1024, %s31_s19, [#allocation7], %s572_s23, %s572_s23, %s573_s24  }
   0xe   :  { %s512_s27 = scalar_lea.vmem %s19_s21, 256  ;;  %p517_p6 = scmp.lt.s32.totalorder %s19_s21, %s19_s21 }
   0xf   :  { %p513_p5 = scmp.ne.s32.totalorder %s19_s21, %s512_s27  ;;  %p518_p7 = scmp.lt.s32.totalorder %s512_s27, %s512_s27 }
  0x11   :  { %p519_p8 = por %p518_p7, %p517_p6 }
  0x13   :  { %p520_p9 = pnand %p519_p8, %p513_p5 }
  0x15   :  { %523 = shalt.err (!%p520_p9)
}
  0x16   :  { %24 = dma.hbm_to_vmem [thread:$0]  %s626_s0, 256, %s19_s21, [#allocation4], %s572_s23, %s572_s23, %s573_s24  }
  0x17   :  { %s574_s30 = smov [#allocation8]  }
  0x18   :  { %s44_s6 = sshll.u32 %s574_s30, 4  ;;  %s45_s6 = int_to_ptr.vmem [resolvable:$true] %s44_s6 }
  0x19   :  { %s532_s7 = scalar_lea.vmem %s45_s6, 1024  ;;  %p537_p11 = scmp.lt.s32.totalorder %s45_s6, %s45_s6 }
  0x1a   :  { %p533_p10 = scmp.ne.s32.totalorder %s45_s6, %s532_s7  ;;  %p538_p12 = scmp.lt.s32.totalorder %s532_s7, %s532_s7 }
  0x1c   :  { %p539_p13 = por %p538_p12, %p537_p11 }
  0x1e   :  { %p540_p0 = pnand %p539_p13, %p533_p10 }
  0x20   :  { %543 = shalt.err (!%p540_p0)
}
  0x21   :  { %50 = dma.hbm_to_vmem [thread:$0]  %s629_s3, 1024, %s45_s6, [#allocation7], %s572_s23, %s572_s23, %s573_s24  }
  0x22   :  { %564 = dma.done.wait [#allocation4], 256  }
  0x23   :  { %565 = vsyncadd [#allocation4], 4294967040 }
  0x24   :  { %566 = dma.done.wait [#allocation7], 2048  }
  0x25   :  { %567 = vsyncadd [#allocation7], 4294965248  ;;  %v466_v0 = vld [vmem:[#allocation6 + $0x38] sm:$0xff]   ;;  %v467_v1 = vld [vmem:[#allocation6 + $0x30] sm:$0xff]  }
  0x26   :  { %418 = vmatprep.subr.bf16.mxu0 %v466_v0  ;;  %v468_v2 = vld [vmem:[#allocation6 + $0x28] sm:$0xff]   ;;  %v469_v3 = vld [vmem:[#allocation6 + $0x20] sm:$0xff]   ;;  %v474_v4 = vld [vmem:[#allocation3] sm:$0xff]  }
  0x27   :  { %419 = vmatpush3.bf16.msra.mxu0 %v466_v0  ;;  %434 = vmatprep.mubr.bf16.mxu0 %v474_v4  ;;  %v476_v5 = vld [vmem:[#allocation8 + $0x38] sm:$0xff]   ;;  %v477_v6 = vld [vmem:[#allocation8 + $0x30] sm:$0xff]   ;;  %v478_v9 = vld [vmem:[#allocation8 + $0x28] sm:$0xff]  }
  0x28   :  { %420 = vmatprep.subr.bf16.mxu0 %v467_v1  ;;  %v470_v7 = vld [vmem:[#allocation6 + $0x18] sm:$0xff]   ;;  %438 = vmatprep.subr.bf16.mxu1 %v476_v5  ;;  %v471_v8 = vld [vmem:[#allocation6 + $0x10] sm:$0xff]   ;;  %v479_v10 = vld [vmem:[#allocation8 + $0x20] sm:$0xff]  }
  0x29   :  { %439 = vmatpush3.bf16.msra.mxu1 %v476_v5  ;;  %v472_v11 = vld [vmem:[#allocation6 + $0x8] sm:$0xff]   ;;  %v480_v12 = vld [vmem:[#allocation8 + $0x18] sm:$0xff]   ;;  %v473_v13 = vld [vmem:[#allocation6] sm:$0xff]  }
  0x2a   :  { %440 = vmatprep.subr.bf16.mxu1 %v477_v6  ;;  %v475_v14 = vld [vmem:[#allocation3 + $0x8] sm:$0xff]   ;;  %v481_v15 = vld [vmem:[#allocation8 + $0x10] sm:$0xff]   ;;  %v482_v16 = vld [vmem:[#allocation8 + $0x8] sm:$0xff]  }
  0x2b   :  { %421 = vmatpush3.bf16.msra.mxu0 %v467_v1  ;;  %v483_v17 = vld [vmem:[#allocation8] sm:$0xff]   ;;  %v378_v20 = vld [vmem:[%s628_s2] ss:$0 sm:$0xff]  ;;  %s575_s2 = smov [#allocation9]  }
  0x2c   :  { %422 = vmatprep.subr.bf16.mxu0 %v468_v2  ;;  %v397_v33 = vld [vmem:[%s630_s4] ss:$0 sm:$0xff]  ;;  %s365_s11 = sshll.u32 %s575_s2, 4  ;;  %s366_s11 = int_to_ptr.vmem [resolvable:$true] %s365_s11 }
  0x2d   :  { %441 = vmatpush3.bf16.msra.mxu1 %v477_v6  ;;  %s544_s12 = scalar_lea.vmem %s366_s11, 512  ;;  %p549_p2 = scmp.lt.s32.totalorder %s366_s11, %s366_s11 }
  0x2e   :  { %442 = vmatprep.subr.bf16.mxu1 %v478_v9  ;;  %p545_p1 = scmp.ne.s32.totalorder %s366_s11, %s544_s12  ;;  %p550_p3 = scmp.lt.s32.totalorder %s544_s12, %s544_s12 }
  0x2f   :  { %423 = vmatpush3.bf16.msra.mxu0 %v468_v2 }
  0x30   :  { %424 = vmatprep.subr.bf16.mxu0 %v469_v3  ;;  %p551_p4 = por %p550_p3, %p549_p2 }
  0x31   :  { %443 = vmatpush3.bf16.msra.mxu1 %v478_v9 }
  0x32   :  { %444 = vmatprep.subr.bf16.mxu1 %v479_v10  ;;  %p552_p5 = pnand %p551_p4, %p545_p1 }
  0x33   :  { %425 = vmatpush3.bf16.msra.mxu0 %v469_v3 }
  0x34   :  { %426 = vmatprep.subr.bf16.mxu0 %v470_v7 }
  0x35   :  { %445 = vmatpush3.bf16.msra.mxu1 %v479_v10 }
  0x36   :  { %446 = vmatprep.subr.bf16.mxu1 %v480_v12 }
  0x37   :  { %427 = vmatpush3.bf16.msra.mxu0 %v470_v7 }
  0x38   :  { %428 = vmatprep.subr.bf16.mxu0 %v471_v8 }
  0x39   :  { %447 = vmatpush3.bf16.msra.mxu1 %v480_v12 }
  0x3a   :  { %448 = vmatprep.subr.bf16.mxu1 %v481_v15 }
  0x3b   :  { %429 = vmatpush3.bf16.msra.mxu0 %v471_v8 }
  0x3c   :  { %430 = vmatprep.subr.bf16.mxu0 %v472_v11 }
  0x3d   :  { %449 = vmatpush3.bf16.msra.mxu1 %v481_v15 }
  0x3e   :  { %450 = vmatprep.subr.bf16.mxu1 %v482_v16 }
  0x3f   :  { %431 = vmatpush3.bf16.msra.mxu0 %v472_v11 }
  0x40   :  { %432 = vmatprep.subr.bf16.mxu0 %v473_v13 }
  0x41   :  { %451 = vmatpush3.bf16.msra.mxu1 %v482_v16 }
  0x42   :  { %452 = vmatprep.subr.bf16.mxu1 %v483_v17 }
  0x43   :  { %433 = vmatpush3.bf16.msra.mxu0 %v473_v13 }
  0x45   :  { %453 = vmatpush3.bf16.msra.mxu1 %v483_v17 }
  0x46   :  { %435 = vmatmul.mubr.bf16.vlgmr.msra.gmra.mxu0 %v475_v14 }
 0x106   :  { %v436_v18 = vpop.f32.mrf.mxu0 }
 0x107   :  { %v201_v24 = vadd.f32 %v436_v18, %v378_v20 }
 0x108   :  { %v192_v19 = vpop.f32.mrf.mxu0 }
 0x109   :  { %v193_v22 = vadd.f32 %v378_v20, %v192_v19  ;;  %v209_v30 = vmax.f32 %v201_v24, 0.0 }
 0x10a   :  { %v437_v21 = vpop.f32.mrf.mxu0 }
 0x10b   :  { %v204_v23 = vadd.f32 %v437_v21, %v378_v20  ;;  %v207_v28 = vmax.f32 %v193_v22, 0.0 }
 0x10c   :  { %v195_v25 = vpop.f32.mrf.mxu0 }
 0x10d   :  { %v196_v26 = vadd.f32 %v378_v20, %v195_v25  ;;  %v210_v27 = vmax.f32 %v204_v23, 0.0 }
 0x10f   :  { %v208_v29 = vmax.f32 %v196_v26, 0.0  ;;  %v216_v32 = vpack.c.bf16 %v210_v27, %v209_v30 }
 0x111   :  { %v215_v31 = vpack.c.bf16 %v208_v29, %v207_v28 }
 0x113   :  { %454 = vmatprep.mubr.bf16.mxu1 %v215_v31 }
 0x114   :  { %455 = vmatmul.mubr.bf16.vlgmr.msra.gmra.mxu1 %v216_v32 }
 0x1d4   :  { %v456_v34 = vpop.f32.mrf.mxu1 }
 0x1d5   :  { %v354_v35 = vadd.f32 %v456_v34, %v397_v33 }
 0x1d6   :  { %v315_v36 = vpop.f32.mrf.mxu1 }
 0x1d7   :  { %358 = vst [vmem:[#allocation9 + $0x10] sm:$0xff] %v354_v35  ;;  %v352_v37 = vadd.f32 %v397_v33, %v315_v36 }
 0x1d8   :  { %v457_v38 = vpop.f32.mrf.mxu1 }
 0x1d9   :  { %356 = vst [vmem:[#allocation9] sm:$0xff] %v352_v37  ;;  %v355_v39 = vadd.f32 %v457_v38, %v397_v33 }
 0x1da   :  { %v318_v40 = vpop.f32.mrf.mxu1 }
 0x1db   :  { %359 = vst [vmem:[#allocation9 + $0x18] sm:$0xff] %v355_v39  ;;  %v353_v41 = vadd.f32 %v397_v33, %v318_v40 }
 0x1dd   :  { %357 = vst [vmem:[#allocation9 + $0x8] sm:$0xff] %v353_v41 }
 0x1de   :  { %555 = shalt.err (!%p552_p5)
}
 0x1df   :  { %s576_s4 = smov 128   ;;  %s577_s13 = smov 8  }
 0x1e0   :  { %371 = dma.vmem_to_hbm [thread:$0]  %s366_s11, 512, %s631_s5, [#allocation5], %s576_s4, %s576_s4, %s577_s13  }
 0x1e1   :  { %568 = dma.done.wait [#allocation5], 512  }
 0x1e2   :  { %569 = vsyncadd [#allocation5], 4294966784 }
 0x1e3   :  { %375 = vsyncpa [#allocation4], 1 }
 0x1e4   :  { %376 = vsyncpa [#allocation7], 1 }
 0x1e5   :  { %377 = vsyncpa [#allocation5], 1 }

</bundles_post_ra>
